<compile_context>
chip_gen: v7x
topology: tpu7x:2x2x1
jax: 0.10.0
libtpu: 0.0.40
codegen_flags: <defaults>
</compile_context>

<pallas_src>
import functools

import jax
import jax.numpy as jnp
from jax import lax
from jax.experimental import pallas as pl
from jax.experimental.pallas import tpu as pltpu

_LANE = 128
_MAX_BLOCK_ROWS = 4096   # (4096, 128) f32 = 2 MiB per input per buffer
_NUM_CHUNKS = 2          # leading "parallel" grid axis (v7x megacore split)


def _rmse_kernel(x_ref, t_ref, out_ref, *, block_rows, steps, rows_valid,
                 mask_from, needs_mask):
    """Grid = (chunk, step); each step consumes one (block_rows, 128) tile.

    out_ref is the per-chunk (8, 128) partial-sum accumulator; its block index
    depends only on the chunk axis, so it stays VMEM-resident across steps.
    Accumulates (tanh(x/2) - tanh(t/2))**2 == 4 * (sigmoid(x) - sigmoid(t))**2.
    """
    c = pl.program_id(0)
    s = pl.program_id(1)

    @pl.when(s == 0)
    def _():
        out_ref[...] = jnp.zeros_like(out_ref)

    x = x_ref[...].astype(jnp.float32)
    t = t_ref[...].astype(jnp.float32)
    d = jnp.tanh(x * 0.5) - jnp.tanh(t * 0.5)
    sq = d * d

    def tile_partial(v):
        # (block_rows, 128) -> (block_rows//8, 8, 128); summing axis 0 is pure
        # element-wise vreg adds (no cross-lane / XLU work).
        return jnp.sum(v.reshape(block_rows // 8, 8, _LANE), axis=0)

    bid = c * steps + s  # unclamped row-block id

    if needs_mask:
        @pl.when(bid < mask_from)
        def _():
            out_ref[...] += tile_partial(sq)

        @pl.when(bid >= mask_from)
        def _():
            # Partial / duplicated trailing blocks: zero out rows past the
            # true extent (Pallas fills out-of-range rows with undefined data,
            # so the sigmoid-cancellation trick is NOT valid there).
            row = (lax.broadcasted_iota(jnp.int32, (block_rows, _LANE), 0)
                   + bid * block_rows)
            out_ref[...] += tile_partial(jnp.where(row < rows_valid, sq, 0.0))
    else:
        out_ref[...] += tile_partial(sq)


def rmse_loss(inputs, targets):
    """Pallas implementation of RMSELoss.forward (returns a scalar f32)."""
    x = inputs.reshape(-1)
    t = targets.reshape(-1)
    n = x.shape[0]

    if n % _LANE != 0:
        # TODO(synk): lengths that are not a multiple of 128 still pay one pad
        # copy; a tiny plain-JAX tail epilogue would remove it.
        pad = _LANE - n % _LANE
        x = jnp.pad(x, (0, pad))
        t = jnp.pad(t, (0, pad))
    rows = x.shape[0] // _LANE  # every row holds valid data (explicit zeros
                                # in the padded tail contribute exactly 0)

    block_rows = min(_MAX_BLOCK_ROWS, pl.cdiv(rows, 8) * 8)
    total_blocks = pl.cdiv(rows, block_rows)
    num_chunks = min(_NUM_CHUNKS, total_blocks)
    steps = pl.cdiv(total_blocks, num_chunks)

    # First row-block id that needs masking (partial last block and/or
    # clamped duplicate blocks).  If no iteration reaches it, the mask path is
    # statically dropped and the hot loop stays mask-free.
    mask_from = total_blocks - 1 if rows % block_rows else total_blocks
    needs_mask = (num_chunks * steps - 1) >= mask_from

    if num_chunks * steps == total_blocks:
        in_idx = lambda c, s: (c * steps + s, 0)
    else:
        # Clamp so trailing (chunk, step) iterations re-read a valid block;
        # their contribution is fully masked out in-kernel.
        in_idx = lambda c, s: (jnp.minimum(c * steps + s, total_blocks - 1), 0)

    x2 = x.reshape(rows, _LANE)   # free: contiguous reshape, no copy
    t2 = t.reshape(rows, _LANE)

    kernel = functools.partial(
        _rmse_kernel, block_rows=block_rows, steps=steps, rows_valid=rows,
        mask_from=mask_from, needs_mask=needs_mask)

    partials = pl.pallas_call(
        kernel,
        out_shape=jax.ShapeDtypeStruct((num_chunks * 8, _LANE), jnp.float32),
        grid_spec=pltpu.PrefetchScalarGridSpec(
            num_scalar_prefetch=0,
            grid=(num_chunks, steps),
            in_specs=[
                pl.BlockSpec((block_rows, _LANE), in_idx),
                pl.BlockSpec((block_rows, _LANE), in_idx),
            ],
            out_specs=pl.BlockSpec((8, _LANE), lambda c, s: (c, 0)),
        ),
        compiler_params=pltpu.CompilerParams(
            dimension_semantics=("parallel", "arbitrary"),
        ),
    )(x2, t2)

    # d was 2*(sigmoid(x) - sigmoid(t)), so divide the sum of squares by 4*n.
    total = jnp.sum(partials)
    return jnp.sqrt(total / (4.0 * n))


def _rmse_ref(inputs, targets):
    """Plain-JAX reference mirroring the PyTorch module exactly."""
    p = jax.nn.sigmoid(inputs.astype(jnp.float32)).reshape(-1)
    q = jax.nn.sigmoid(targets.astype(jnp.float32)).reshape(-1)
    return jnp.sqrt(jnp.mean((p - q) ** 2))


if __name__ == "__main__":
    key = jax.random.PRNGKey(0)
    k1, k2 = jax.random.split(key)
    # NCHW logits for both inputs and targets (both pass through sigmoid).
    inputs = jax.random.normal(k1, (2, 4, 16, 16), dtype=jnp.float32)
    targets = jax.random.normal(k2, (2, 4, 16, 16), dtype=jnp.float32)

    loss = jax.block_until_ready(rmse_loss(inputs, targets))
    ref = jax.block_until_ready(_rmse_ref(inputs, targets))

    assert jnp.allclose(loss, ref, rtol=1e-5, atol=1e-5), (loss, ref)
    print("KERNEL_OK")
</pallas_src>

<mosaic_0001>
module attributes {stable_mosaic.version = 11 : i64} {
  func.func @_rmse_kernel(%arg0: i32, %arg1: i32, %arg2: memref<16x128xf32, #tpu.memory_space<vmem>>, %arg3: memref<16x128xf32, #tpu.memory_space<vmem>>, %arg4: memref<8x128xf32, #tpu.memory_space<vmem>>) attributes {dimension_semantics = [#tpu.dimension_semantics<parallel>, #tpu.dimension_semantics<arbitrary>], iteration_bounds = array<i64: 1, 1>, scalar_prefetch = 0 : i64, scratch_operands = 0 : i64, tpu.core_type = #tpu.core_type<tc>, window_params = [{transform_indices = @transform_0, window_bounds = array<i64: 16, 128>}, {transform_indices = @transform_1, window_bounds = array<i64: 16, 128>}, {transform_indices = @transform_2, window_bounds = array<i64: 8, 128>}]} {
    %c0_i32 = arith.constant 0 : i32
    %0 = arith.cmpi eq, %arg1, %c0_i32 : i32
    %1 = arith.extui %0 : i1 to i32
    %c0_i32_0 = arith.constant 0 : i32
    %2 = arith.cmpi ne, %1, %c0_i32_0 : i32
    scf.if %2 {
      %cst_10 = arith.constant 0.000000e+00 : f32
      %18 = vector.broadcast %cst_10 : f32 to vector<8x128xf32>
      %c0_11 = arith.constant 0 : index
      %c0_12 = arith.constant 0 : index
      %19 = vector.load %arg4[%c0_11, %c0_12] : memref<8x128xf32, #tpu.memory_space<vmem>>, vector<8x128xf32>
      tpu.vector_store %arg4[%c0_11, %c0_12], %18 {strides = array<i32>} : memref<8x128xf32, #tpu.memory_space<vmem>>, vector<8x128xf32>,
    } else {
    }
    %c0 = arith.constant 0 : index
    %c0_1 = arith.constant 0 : index
    %3 = vector.load %arg2[%c0, %c0_1] : memref<16x128xf32, #tpu.memory_space<vmem>>, vector<16x128xf32>
    %c0_2 = arith.constant 0 : index
    %c0_3 = arith.constant 0 : index
    %4 = vector.load %arg3[%c0_2, %c0_3] : memref<16x128xf32, #tpu.memory_space<vmem>>, vector<16x128xf32>
    %cst = arith.constant 5.000000e-01 : f32
    %5 = vector.broadcast %cst : f32 to vector<16x128xf32>
    %6 = arith.mulf %3, %5 : vector<16x128xf32>
    %7 = math.tanh %6 : vector<16x128xf32>
    %cst_4 = arith.constant 5.000000e-01 : f32
    %8 = vector.broadcast %cst_4 : f32 to vector<16x128xf32>
    %9 = arith.mulf %4, %8 : vector<16x128xf32>
    %10 = math.tanh %9 : vector<16x128xf32>
    %11 = arith.subf %7, %10 : vector<16x128xf32>
    %12 = arith.mulf %11, %11 : vector<16x128xf32>
    %c0_5 = arith.constant 0 : index
    %c0_6 = arith.constant 0 : index
    %13 = vector.load %arg4[%c0_5, %c0_6] : memref<8x128xf32, #tpu.memory_space<vmem>>, vector<8x128xf32>
    %14 = vector.shape_cast %12 : vector<16x128xf32> to vector<2x8x128xf32>
    %cst_7 = arith.constant dense<0.000000e+00> : vector<8x128xf32>
    %15 = vector.multi_reduction <add>, %14, %cst_7 [0] : vector<2x8x128xf32> to vector<8x128xf32>
    %16 = arith.addf %13, %15 : vector<8x128xf32>
    %c0_8 = arith.constant 0 : index
    %c0_9 = arith.constant 0 : index
    %17 = vector.load %arg4[%c0_8, %c0_9] : memref<8x128xf32, #tpu.memory_space<vmem>>, vector<8x128xf32>
    tpu.vector_store %arg4[%c0_8, %c0_9], %16 {strides = array<i32>} : memref<8x128xf32, #tpu.memory_space<vmem>>, vector<8x128xf32>,
    return
  }
  func.func @transform_0(%arg0: i32, %arg1: i32) -> (i32, i32) {
    %c1_i32 = arith.constant 1 : i32
    %0 = arith.muli %arg0, %c1_i32 : i32
    %1 = arith.addi %0, %arg1 : i32
    %c0_i32 = arith.constant 0 : i32
    %c0_i32_0 = arith.constant 0 : i32
    return %1, %c0_i32 : i32, i32
  }
  func.func @transform_1(%arg0: i32, %arg1: i32) -> (i32, i32) {
    %c1_i32 = arith.constant 1 : i32
    %0 = arith.muli %arg0, %c1_i32 : i32
    %1 = arith.addi %0, %arg1 : i32
    %c0_i32 = arith.constant 0 : i32
    %c0_i32_0 = arith.constant 0 : i32
    return %1, %c0_i32 : i32, i32
  }
  func.func @transform_2(%arg0: i32, %arg1: i32) -> (i32, i32) {
    %c0_i32 = arith.constant 0 : i32
    %c0_i32_0 = arith.constant 0 : i32
    return %arg0, %c0_i32 : i32, i32
  }
}

</mosaic_0001>

<bundles_post_ra>
// kernel: tpu_custom_call.1
= control target key start
LH: loop header
LB: loop body
LE: loop exit
PB: predicated region body
PF: predicated region fallthrough
CT: control target
= control target key end

     0   :  { %7 = vsyncpa [#allocation3], 0  ;;  %s235_s0 = inlined_call_operand.hbm [shape: f32[16,128], index: 0, kind: input, shape index: {}]   ;;  %s236_s1 = inlined_call_operand.hbm [shape: f32[16,128], index: 1, kind: input, shape index: {}]   ;;  %s237_s2 = inlined_call_operand.hbm [shape: f32[8,128], index: 2, kind: output, shape index: {}]  }
   0x1   :  { %8 = vsyncpa [#allocation6], 0 }
   0x2   :  { %9 = vsyncpa [#allocation4], 0  ;;  %s179_s9 = smov [#allocation2]   ;;  %s107_s13 = scalar_lea.hbm %s235_s0, 256 }
   0x3   :  { %s19_s10 = sshll.u32 %s179_s9, 4  ;;  %p108_p0 = scmp.ne.s32.totalorder %s235_s0, %s107_s13  ;;  %s20_s10 = int_to_ptr.vmem [resolvable:$true] %s19_s10 }
   0x4   :  { %p111_p1 = scmp.lt.u32.totalorder %s107_s13, %s235_s0 }
   0x6   :  { %p113_p2 = pnand %p111_p1, %p108_p0 }
   0x8   :  { %116 = shalt.err (!%p113_p2)
}
   0x9   :  { %s117_s18 = scalar_lea.vmem %s20_s10, 256  ;;  %p122_p4 = scmp.lt.s32.totalorder %s20_s10, %s20_s10 }
   0xa   :  { %p118_p3 = scmp.ne.s32.totalorder %s20_s10, %s117_s18  ;;  %p123_p5 = scmp.lt.s32.totalorder %s117_s18, %s117_s18 }
   0xc   :  { %p124_p6 = por %p123_p5, %p122_p4 }
   0xe   :  { %p125_p7 = pnand %p124_p6, %p118_p3 }
  0x10   :  { %128 = shalt.err (!%p125_p7)
}
  0x11   :  { %s180_s19 = smov 128   ;;  %s181_s20 = smov 8  }
  0x12   :  { %25 = dma.hbm_to_vmem [thread:$0]  %s235_s0, 256, %s20_s10, [#allocation3], %s180_s19, %s180_s19, %s181_s20  }
  0x13   :  { %s182_s23 = smov [#allocation5]   ;;  %s129_s27 = scalar_lea.hbm %s236_s1, 256 }
  0x14   :  { %s35_s24 = sshll.u32 %s182_s23, 4  ;;  %p130_p8 = scmp.ne.s32.totalorder %s236_s1, %s129_s27  ;;  %s36_s24 = int_to_ptr.vmem [resolvable:$true] %s35_s24 }
  0x15   :  { %p133_p9 = scmp.lt.u32.totalorder %s129_s27, %s236_s1 }
  0x17   :  { %p135_p10 = pnand %p133_p9, %p130_p8 }
  0x19   :  { %138 = shalt.err (!%p135_p10)
}
  0x1a   :  { %s139_s4 = scalar_lea.vmem %s36_s24, 256  ;;  %p144_p12 = scmp.lt.s32.totalorder %s36_s24, %s36_s24 }
  0x1b   :  { %p140_p11 = scmp.ne.s32.totalorder %s36_s24, %s139_s4  ;;  %p145_p13 = scmp.lt.s32.totalorder %s139_s4, %s139_s4 }
  0x1d   :  { %p146_p0 = por %p145_p13, %p144_p12 }
  0x1f   :  { %p147_p1 = pnand %p146_p0, %p140_p11 }
  0x21   :  { %150 = shalt.err (!%p147_p1)
}
  0x22   :  { %41 = dma.hbm_to_vmem [thread:$0]  %s236_s1, 256, %s36_s24, [#allocation6], %s180_s19, %s180_s19, %s181_s20  }
  0x23   :  { %173 = dma.done.wait [#allocation3], 256  }
  0x24   :  { %174 = vsyncadd [#allocation3], 4294967040 }
  0x25   :  { %175 = dma.done.wait [#allocation6], 256  }
  0x26   :  { %176 = vsyncadd [#allocation6], 4294967040  ;;  %v57_v0 = vld [vmem:[#allocation2] sm:$0xff]  ;;  %v58_v1 = vld [vmem:[#allocation2 + $0x8] sm:$0xff]  ;;  %s183_s1 = smov [#allocation7]  }
  0x27   :  { %v59_v2 = vld [vmem:[#allocation5] sm:$0xff]  ;;  %v60_v3 = vld [vmem:[#allocation5 + $0x8] sm:$0xff]  ;;  %v61_v4 = vmul.f32 0.5, %v57_v0  ;;  %v62_v5 = vmul.f32 0.5, %v58_v1  ;;  %s83_s6 = sshll.u32 %s183_s1, 4  ;;  %s84_s6 = int_to_ptr.vmem [resolvable:$true] %s83_s6 }
  0x28   :  { %v65_v6 = vmul.f32 0.5, %v59_v2  ;;  %v66_v7 = vmul.f32 0.5, %v60_v3  ;;  %s151_s7 = scalar_lea.vmem %s84_s6, 128  ;;  %p156_p3 = scmp.lt.s32.totalorder %s84_s6, %s84_s6 }
  0x29   :  { %99 = vtanh.f32 %v61_v4  ;;  %p152_p2 = scmp.ne.s32.totalorder %s84_s6, %s151_s7  ;;  %p157_p4 = scmp.lt.s32.totalorder %s151_s7, %s151_s7 }
  0x2a   :  { %101 = vtanh.f32 %v62_v5 }
  0x2b   :  { %103 = vtanh.f32 %v65_v6  ;;  %p158_p5 = por %p157_p4, %p156_p3 }
  0x2c   :  { %105 = vtanh.f32 %v66_v7 }
  0x2d   :  { %p159_p6 = pnand %p158_p5, %p152_p2 }
  0x33   :  { %v100_v8 = vpop.eup %99 }
  0x34   :  { %v102_v9 = vpop.eup %101 }
  0x35   :  { %v104_v10 = vpop.eup %103 }
  0x36   :  { %v106_v11 = vpop.eup %105  ;;  %v69_v12 = vsub.f32 %v100_v8, %v104_v10 }
  0x37   :  { %v70_v13 = vsub.f32 %v102_v9, %v106_v11 }
  0x38   :  { %v71_v14 = vmul.f32 %v69_v12, %v69_v12 }
  0x39   :  { %v72_v15 = vmul.f32 %v70_v13, %v70_v13 }
  0x3b   :  { %v74_v16 = vadd.f32 %v72_v15, %v71_v14 }
  0x3d   :  { %76 = vst [vmem:[#allocation7] sm:$0xff] %v74_v16 }
  0x3e   :  { %162 = shalt.err (!%p159_p6)
}
  0x3f   :  { %s163_s10 = scalar_lea.hbm %s237_s2, 128 }
  0x40   :  { %p164_p7 = scmp.ne.s32.totalorder %s237_s2, %s163_s10  ;;  %p167_p8 = scmp.lt.u32.totalorder %s163_s10, %s237_s2 }
  0x42   :  { %p169_p9 = pnand %p167_p8, %p164_p7 }
  0x44   :  { %172 = shalt.err (!%p169_p9)
}
  0x45   :  { %86 = dma.vmem_to_hbm [thread:$0]  %s84_s6, 128, %s237_s2, [#allocation4]  }
  0x46   :  { %177 = dma.done.wait [#allocation4], 128  }
  0x47   :  { %178 = vsyncadd [#allocation4], 4294967168 }
  0x48   :  { %90 = vsyncpa [#allocation3], 1 }
  0x49   :  { %91 = vsyncpa [#allocation6], 1 }
  0x4a   :  { %92 = vsyncpa [#allocation4], 1 }

</bundles_post_ra>
